<compile_context>
chip_gen: v7x
topology: tpu7x:2x2x1
jax: 0.10.0
libtpu: 0.0.40
codegen_flags: <defaults>
</compile_context>

<pallas_src>
import functools

import jax
import jax.numpy as jnp
from jax.experimental import pallas as pl
from jax.experimental.pallas import tpu as pltpu

EPS = 1e-5
HID = 64      # hidden width of DNN_block (64 -> 64)
PAD = 128     # lane-dense width used inside the kernel
NVEC = 8      # rows reserved in the packed buffer for the (1, 128) vectors


def dnn_block_kernel(x_ref, p_ref, o_ref, *, inv_b):
    x = x_ref[...]                         # (B, 128) f32, cols >= din are zero

    # ---- packed parameters (single VMEM buffer, resident across the grid) -----
    vecs = p_ref[0:NVEC, :]                # (8, 128): bb1f, g1, be1, bb2, g2, be2, bb3, 0
    bb1 = vecs[0:1, :]
    g1 = vecs[1:2, :]
    be1 = vecs[2:3, :]
    bb2 = vecs[3:4, :]
    g2 = vecs[4:5, :]
    be2 = vecs[5:6, :]
    bb3 = vecs[6:7, :]

    w1 = p_ref[NVEC:NVEC + PAD, :]                 # (128, 128) three identical slabs
    w2 = p_ref[NVEC + PAD:NVEC + 2 * PAD, :]
    w3 = p_ref[NVEC + 2 * PAD:NVEC + 3 * PAD, :]

    # ---- input BatchNorm: normalization only (affine folded into w1/bb1) ------
    # Padded columns are all-zero -> mean 0, var 0 -> xn stays exactly 0 there.
    s1 = jnp.sum(x, axis=0, keepdims=True)          # both reductions independent
    s2 = jnp.sum(x * x, axis=0, keepdims=True)
    mean = s1 * inv_b
    var = jnp.maximum(s2 * inv_b - mean * mean, 0.0)
    scale = jax.lax.rsqrt(var + EPS)
    xn = x * scale - mean * scale

    # ---- Linear -> ReLU -> BatchNorm (per-column scale/shift form) ------------
    def lin_relu_bn(h, w, bb, g, be):
        h = jnp.dot(h, w, preferred_element_type=jnp.float32) + bb
        h = jnp.maximum(h, 0.0)
        t1 = jnp.sum(h, axis=0, keepdims=True)
        t2 = jnp.sum(h * h, axis=0, keepdims=True)
        m = t1 * inv_b
        v = jnp.maximum(t2 * inv_b - m * m, 0.0)
        sc = g * jax.lax.rsqrt(v + EPS)
        sh = be - m * sc
        return h * sc + sh

    h = lin_relu_bn(xn, w1, bb1, g1, be1)
    h = lin_relu_bn(h, w2, bb2, g2, be2)

    # ---- final Linear; lane-dense (B, 128) store (cols >= embed_dim are zero) --
    o_ref[...] = jnp.dot(h, w3, preferred_element_type=jnp.float32) + bb3


def pack_params(params):
    """One-time host-side packing: fold input-BN affine into W1/bb1 and pack all
    parameters into a single lane-dense (NVEC + 3*PAD, 128) f32 buffer."""
    din = params["w1"].shape[0]
    embed_dim = params["w3"].shape[1]

    # fold input-BN affine:  (x_n * g0 + b0) @ W1 + bb1  ==  x_n @ (g0^T * W1) + (b0 @ W1 + bb1)
    w1f = params["g0"].reshape(-1, 1) * params["w1"]          # (din, 64)
    bb1f = params["b0"] @ params["w1"] + params["bb1"]        # (1, 64)

    def pad_vec(v):
        return jnp.pad(v.astype(jnp.float32), ((0, 0), (0, PAD - v.shape[1])))

    vecs = jnp.concatenate(
        [pad_vec(bb1f), pad_vec(params["g1"]), pad_vec(params["be1"]),
         pad_vec(params["bb2"]), pad_vec(params["g2"]), pad_vec(params["be2"]),
         pad_vec(params["bb3"]), jnp.zeros((1, PAD), jnp.float32)],
        axis=0,
    )                                                          # (8, 128)

    # NOTE: zero padding (not 1.0) of gammas/biases/weight rows is load-bearing:
    # it keeps lanes 64..127 exactly zero through the whole stack.
    w1p = jnp.pad(w1f, ((0, PAD - din), (0, PAD - HID)))               # (128, 128)
    w2p = jnp.pad(params["w2"], ((0, PAD - HID), (0, PAD - HID)))      # (128, 128)
    w3p = jnp.pad(params["w3"], ((0, PAD - HID), (0, PAD - embed_dim)))  # (128, 128)

    packed = jnp.concatenate([vecs, w1p, w2p, w3p], axis=0).astype(jnp.float32)
    return packed, embed_dim


def model_forward(x_batches, packed, embed_dim):
    """x_batches: (Nb, B, din) = Nb independent BatchNorm batches of size B each.
    One pallas_call; params stay VMEM-resident across the whole grid."""
    Nb, B, din = x_batches.shape
    xp = jnp.pad(x_batches.astype(jnp.float32),
                 ((0, 0), (0, 0), (0, PAD - din))).reshape(Nb * B, PAD)

    kernel = functools.partial(dnn_block_kernel, inv_b=1.0 / B)
    out = pl.pallas_call(
        kernel,
        out_shape=jax.ShapeDtypeStruct((Nb * B, PAD), jnp.float32),
        grid=(Nb,),
        in_specs=[
            pl.BlockSpec((B, PAD), lambda i: (i, 0)),          # per-batch tile
            pl.BlockSpec(packed.shape, lambda i: (0, 0)),      # resident params
        ],
        out_specs=pl.BlockSpec((B, PAD), lambda i: (i, 0)),
        compiler_params=pltpu.CompilerParams(
            dimension_semantics=("parallel",)),                # use both v7x TCs
    )(xp, packed)

    # TODO(synk): consumers that accept a lane-padded (Nb, B, 128) slab can skip this slice.
    return out.reshape(Nb, B, PAD)[..., :embed_dim]


def init_params(key, embed_input_dim, embed_dim):
    dims = [embed_input_dim, 64, 64, embed_dim]
    keys = jax.random.split(key, 6)

    def linear(k, d_in, d_out):
        kw, kb = jax.random.split(k)
        bound = 1.0 / jnp.sqrt(d_in)
        w = jax.random.uniform(kw, (d_in, d_out), jnp.float32, -bound, bound)  # (in, out)
        b = jax.random.uniform(kb, (1, d_out), jnp.float32, -bound, bound)
        return w, b

    w1, bb1 = linear(keys[0], dims[0], dims[1])
    w2, bb2 = linear(keys[1], dims[1], dims[2])
    w3, bb3 = linear(keys[2], dims[2], dims[3])

    def bn_params(k, d):
        kg, kb = jax.random.split(k)
        g = 1.0 + 0.1 * jax.random.normal(kg, (1, d), jnp.float32)
        b = 0.1 * jax.random.normal(kb, (1, d), jnp.float32)
        return g, b

    g0, b0 = bn_params(keys[3], dims[0])
    g1, be1 = bn_params(keys[4], dims[1])
    g2, be2 = bn_params(keys[5], dims[2])

    return dict(g0=g0, b0=b0,
                w1=w1, bb1=bb1, g1=g1, be1=be1,
                w2=w2, bb2=bb2, g2=g2, be2=be2,
                w3=w3, bb3=bb3)


def reference_forward(x, p):
    # pure-JAX reference with PyTorch training-mode BatchNorm semantics (one batch)
    def bn(h, g, b):
        m = jnp.mean(h, axis=0, keepdims=True)
        v = jnp.mean((h - m) ** 2, axis=0, keepdims=True)
        return (h - m) / jnp.sqrt(v + EPS) * g + b

    h = bn(x, p["g0"], p["b0"])
    h = bn(jnp.maximum(h @ p["w1"] + p["bb1"], 0.0), p["g1"], p["be1"])
    h = bn(jnp.maximum(h @ p["w2"] + p["bb2"], 0.0), p["g2"], p["be2"])
    return h @ p["w3"] + p["bb3"]


if __name__ == "__main__":
    embed_input_dim = 16
    embed_nlayers = 3   # only used by cascade_dims in __init__; no effect on forward
    embed_dim = 32
    B = 8               # per-batch size (BatchNorm statistics computed over these rows)
    Nb = 4              # number of independent batches processed by one pallas_call

    key = jax.random.PRNGKey(0)
    kx, kp = jax.random.split(key)
    x = jax.random.normal(kx, (Nb, B, embed_input_dim), jnp.float32)
    params = init_params(kp, embed_input_dim, embed_dim)

    packed, edim = pack_params(params)   # one-time host-side packing/folding

    out = model_forward(x, packed, edim)
    out = jax.block_until_ready(out)

    ref = jax.vmap(lambda xb: reference_forward(xb, params))(x)  # per-batch BN stats
    assert out.shape == (Nb, B, embed_dim)
    assert jnp.allclose(out, ref, atol=1e-4, rtol=1e-4)

    print("KERNEL_OK")
</pallas_src>

<mosaic_0001>
module attributes {stable_mosaic.version = 11 : i64} {
  func.func @dnn_block_kernel(%arg0: i32, %arg1: memref<8x128xf32, #tpu.memory_space<vmem>>, %arg2: memref<392x128xf32, #tpu.memory_space<vmem>>, %arg3: memref<8x128xf32, #tpu.memory_space<vmem>>) attributes {dimension_semantics = [#tpu.dimension_semantics<parallel>], iteration_bounds = array<i64: 4>, scalar_prefetch = 0 : i64, scratch_operands = 0 : i64, tpu.core_type = #tpu.core_type<tc>, window_params = [{transform_indices = @transform_0, window_bounds = array<i64: 8, 128>}, {pipeline_mode = #tpu.pipeline_mode<synchronous>, transform_indices = @transform_1, window_bounds = array<i64: 392, 128>}, {transform_indices = @transform_2, window_bounds = array<i64: 8, 128>}]} {
    %c0 = arith.constant 0 : index
    %c0_0 = arith.constant 0 : index
    %0 = vector.load %arg1[%c0, %c0_0] : memref<8x128xf32, #tpu.memory_space<vmem>>, vector<8x128xf32>
    %c0_1 = arith.constant 0 : index
    %c0_2 = arith.constant 0 : index
    %1 = vector.load %arg2[%c0_1, %c0_2] : memref<392x128xf32, #tpu.memory_space<vmem>>, vector<8x128xf32>
    %2 = vector.extract_strided_slice %1 {offsets = [0, 0], sizes = [1, 128], strides = [1, 1]} : vector<8x128xf32> to vector<1x128xf32>
    %3 = vector.extract_strided_slice %1 {offsets = [1, 0], sizes = [1, 128], strides = [1, 1]} : vector<8x128xf32> to vector<1x128xf32>
    %4 = vector.extract_strided_slice %1 {offsets = [2, 0], sizes = [1, 128], strides = [1, 1]} : vector<8x128xf32> to vector<1x128xf32>
    %5 = vector.extract_strided_slice %1 {offsets = [3, 0], sizes = [1, 128], strides = [1, 1]} : vector<8x128xf32> to vector<1x128xf32>
    %6 = vector.extract_strided_slice %1 {offsets = [4, 0], sizes = [1, 128], strides = [1, 1]} : vector<8x128xf32> to vector<1x128xf32>
    %7 = vector.extract_strided_slice %1 {offsets = [5, 0], sizes = [1, 128], strides = [1, 1]} : vector<8x128xf32> to vector<1x128xf32>
    %8 = vector.extract_strided_slice %1 {offsets = [6, 0], sizes = [1, 128], strides = [1, 1]} : vector<8x128xf32> to vector<1x128xf32>
    %c8 = arith.constant 8 : index
    %c0_3 = arith.constant 0 : index
    %9 = vector.load %arg2[%c8, %c0_3] : memref<392x128xf32, #tpu.memory_space<vmem>>, vector<128x128xf32>
    %c136 = arith.constant 136 : index
    %c0_4 = arith.constant 0 : index
    %10 = vector.load %arg2[%c136, %c0_4] : memref<392x128xf32, #tpu.memory_space<vmem>>, vector<128x128xf32>
    %c264 = arith.constant 264 : index
    %c0_5 = arith.constant 0 : index
    %11 = vector.load %arg2[%c264, %c0_5] : memref<392x128xf32, #tpu.memory_space<vmem>>, vector<128x128xf32>
    %cst = arith.constant dense<0.000000e+00> : vector<128xf32>
    %12 = vector.multi_reduction <add>, %0, %cst [0] : vector<8x128xf32> to vector<128xf32>
    %13 = vector.shape_cast %12 : vector<128xf32> to vector<1x128xf32>
    %14 = arith.mulf %0, %0 : vector<8x128xf32>
    %cst_6 = arith.constant dense<0.000000e+00> : vector<128xf32>
    %15 = vector.multi_reduction <add>, %14, %cst_6 [0] : vector<8x128xf32> to vector<128xf32>
    %16 = vector.shape_cast %15 : vector<128xf32> to vector<1x128xf32>
    %cst_7 = arith.constant 1.250000e-01 : f32
    %17 = vector.broadcast %cst_7 : f32 to vector<1x128xf32>
    %18 = arith.mulf %13, %17 : vector<1x128xf32>
    %cst_8 = arith.constant 1.250000e-01 : f32
    %19 = vector.broadcast %cst_8 : f32 to vector<1x128xf32>
    %20 = arith.mulf %16, %19 : vector<1x128xf32>
    %21 = arith.mulf %18, %18 : vector<1x128xf32>
    %22 = arith.subf %20, %21 : vector<1x128xf32>
    %cst_9 = arith.constant 0.000000e+00 : f32
    %23 = vector.broadcast %cst_9 : f32 to vector<1x128xf32>
    %24 = arith.maximumf %22, %23 : vector<1x128xf32>
    %cst_10 = arith.constant 9.99999974E-6 : f32
    %25 = vector.broadcast %cst_10 : f32 to vector<1x128xf32>
    %26 = arith.addf %24, %25 : vector<1x128xf32>
    %27 = math.rsqrt %26 : vector<1x128xf32>
    %28 = vector.broadcast %27 : vector<1x128xf32> to vector<8x128xf32>
    %29 = arith.mulf %0, %28 : vector<8x128xf32>
    %30 = arith.mulf %18, %27 : vector<1x128xf32>
    %31 = vector.broadcast %30 : vector<1x128xf32> to vector<8x128xf32>
    %32 = arith.subf %29, %31 : vector<8x128xf32>
    %cst_11 = arith.constant dense<0.000000e+00> : vector<8x128xf32>
    %33 = tpu.matmul %32, %9, %cst_11 {dimension_numbers = #tpu.dot_dimension_numbers<[1], [0], [0], [1], [0, 0, 1, 1], [], []>} : vector<8x128xf32>, vector<128x128xf32>, vector<8x128xf32> -> vector<8x128xf32>
    %34 = vector.broadcast %2 : vector<1x128xf32> to vector<8x128xf32>
    %35 = arith.addf %33, %34 : vector<8x128xf32>
    %cst_12 = arith.constant 0.000000e+00 : f32
    %36 = vector.broadcast %cst_12 : f32 to vector<8x128xf32>
    %37 = arith.maximumf %35, %36 : vector<8x128xf32>
    %cst_13 = arith.constant dense<0.000000e+00> : vector<128xf32>
    %38 = vector.multi_reduction <add>, %37, %cst_13 [0] : vector<8x128xf32> to vector<128xf32>
    %39 = vector.shape_cast %38 : vector<128xf32> to vector<1x128xf32>
    %40 = arith.mulf %37, %37 : vector<8x128xf32>
    %cst_14 = arith.constant dense<0.000000e+00> : vector<128xf32>
    %41 = vector.multi_reduction <add>, %40, %cst_14 [0] : vector<8x128xf32> to vector<128xf32>
    %42 = vector.shape_cast %41 : vector<128xf32> to vector<1x128xf32>
    %cst_15 = arith.constant 1.250000e-01 : f32
    %43 = vector.broadcast %cst_15 : f32 to vector<1x128xf32>
    %44 = arith.mulf %39, %43 : vector<1x128xf32>
    %cst_16 = arith.constant 1.250000e-01 : f32
    %45 = vector.broadcast %cst_16 : f32 to vector<1x128xf32>
    %46 = arith.mulf %42, %45 : vector<1x128xf32>
    %47 = arith.mulf %44, %44 : vector<1x128xf32>
    %48 = arith.subf %46, %47 : vector<1x128xf32>
    %cst_17 = arith.constant 0.000000e+00 : f32
    %49 = vector.broadcast %cst_17 : f32 to vector<1x128xf32>
    %50 = arith.maximumf %48, %49 : vector<1x128xf32>
    %cst_18 = arith.constant 9.99999974E-6 : f32
    %51 = vector.broadcast %cst_18 : f32 to vector<1x128xf32>
    %52 = arith.addf %50, %51 : vector<1x128xf32>
    %53 = math.rsqrt %52 : vector<1x128xf32>
    %54 = arith.mulf %3, %53 : vector<1x128xf32>
    %55 = arith.mulf %44, %54 : vector<1x128xf32>
    %56 = arith.subf %4, %55 : vector<1x128xf32>
    %57 = vector.broadcast %54 : vector<1x128xf32> to vector<8x128xf32>
    %58 = arith.mulf %37, %57 : vector<8x128xf32>
    %59 = vector.broadcast %56 : vector<1x128xf32> to vector<8x128xf32>
    %60 = arith.addf %58, %59 : vector<8x128xf32>
    %cst_19 = arith.constant dense<0.000000e+00> : vector<8x128xf32>
    %61 = tpu.matmul %60, %10, %cst_19 {dimension_numbers = #tpu.dot_dimension_numbers<[1], [0], [0], [1], [0, 0, 1, 1], [], []>} : vector<8x128xf32>, vector<128x128xf32>, vector<8x128xf32> -> vector<8x128xf32>
    %62 = vector.broadcast %5 : vector<1x128xf32> to vector<8x128xf32>
    %63 = arith.addf %61, %62 : vector<8x128xf32>
    %cst_20 = arith.constant 0.000000e+00 : f32
    %64 = vector.broadcast %cst_20 : f32 to vector<8x128xf32>
    %65 = arith.maximumf %63, %64 : vector<8x128xf32>
    %cst_21 = arith.constant dense<0.000000e+00> : vector<128xf32>
    %66 = vector.multi_reduction <add>, %65, %cst_21 [0] : vector<8x128xf32> to vector<128xf32>
    %67 = vector.shape_cast %66 : vector<128xf32> to vector<1x128xf32>
    %68 = arith.mulf %65, %65 : vector<8x128xf32>
    %cst_22 = arith.constant dense<0.000000e+00> : vector<128xf32>
    %69 = vector.multi_reduction <add>, %68, %cst_22 [0] : vector<8x128xf32> to vector<128xf32>
    %70 = vector.shape_cast %69 : vector<128xf32> to vector<1x128xf32>
    %cst_23 = arith.constant 1.250000e-01 : f32
    %71 = vector.broadcast %cst_23 : f32 to vector<1x128xf32>
    %72 = arith.mulf %67, %71 : vector<1x128xf32>
    %cst_24 = arith.constant 1.250000e-01 : f32
    %73 = vector.broadcast %cst_24 : f32 to vector<1x128xf32>
    %74 = arith.mulf %70, %73 : vector<1x128xf32>
    %75 = arith.mulf %72, %72 : vector<1x128xf32>
    %76 = arith.subf %74, %75 : vector<1x128xf32>
    %cst_25 = arith.constant 0.000000e+00 : f32
    %77 = vector.broadcast %cst_25 : f32 to vector<1x128xf32>
    %78 = arith.maximumf %76, %77 : vector<1x128xf32>
    %cst_26 = arith.constant 9.99999974E-6 : f32
    %79 = vector.broadcast %cst_26 : f32 to vector<1x128xf32>
    %80 = arith.addf %78, %79 : vector<1x128xf32>
    %81 = math.rsqrt %80 : vector<1x128xf32>
    %82 = arith.mulf %6, %81 : vector<1x128xf32>
    %83 = arith.mulf %72, %82 : vector<1x128xf32>
    %84 = arith.subf %7, %83 : vector<1x128xf32>
    %85 = vector.broadcast %82 : vector<1x128xf32> to vector<8x128xf32>
    %86 = arith.mulf %65, %85 : vector<8x128xf32>
    %87 = vector.broadcast %84 : vector<1x128xf32> to vector<8x128xf32>
    %88 = arith.addf %86, %87 : vector<8x128xf32>
    %cst_27 = arith.constant dense<0.000000e+00> : vector<8x128xf32>
    %89 = tpu.matmul %88, %11, %cst_27 {dimension_numbers = #tpu.dot_dimension_numbers<[1], [0], [0], [1], [0, 0, 1, 1], [], []>} : vector<8x128xf32>, vector<128x128xf32>, vector<8x128xf32> -> vector<8x128xf32>
    %90 = vector.broadcast %8 : vector<1x128xf32> to vector<8x128xf32>
    %91 = arith.addf %89, %90 : vector<8x128xf32>
    %c0_28 = arith.constant 0 : index
    %c0_29 = arith.constant 0 : index
    %92 = vector.load %arg3[%c0_28, %c0_29] : memref<8x128xf32, #tpu.memory_space<vmem>>, vector<8x128xf32>
    tpu.vector_store %arg3[%c0_28, %c0_29], %91 {strides = array<i32>} : memref<8x128xf32, #tpu.memory_space<vmem>>, vector<8x128xf32>,
    return
  }
  func.func @transform_0(%arg0: i32) -> (i32, i32) {
    %c0_i32 = arith.constant 0 : i32
    %c0_i32_0 = arith.constant 0 : i32
    return %arg0, %c0_i32 : i32, i32
  }
  func.func @transform_1(%arg0: i32) -> (i32, i32) {
    %c0_i32 = arith.constant 0 : i32
    %c0_i32_0 = arith.constant 0 : i32
    %c0_i32_1 = arith.constant 0 : i32
    return %c0_i32, %c0_i32_0 : i32, i32
  }
  func.func @transform_2(%arg0: i32) -> (i32, i32) {
    %c0_i32 = arith.constant 0 : i32
    %c0_i32_0 = arith.constant 0 : i32
    return %arg0, %c0_i32 : i32, i32
  }
}

</mosaic_0001>

<bundles_post_ra>
// kernel: tpu_custom_call.1
= control target key start
LH: loop header
LB: loop body
LE: loop exit
PB: predicated region body
PF: predicated region fallthrough
CT: control target
= control target key end

     0   :  { %7 = vsyncpa [#allocation3], 0  ;;  %s1340_s0 = inlined_call_operand.hbm [shape: f32[32,128], index: 0, kind: input, shape index: {}]   ;;  %s1341_s1 = inlined_call_operand.hbm [shape: f32[392,128], index: 1, kind: input, shape index: {}]   ;;  %s1342_s2 = inlined_call_operand.hbm [shape: f32[32,128], index: 2, kind: output, shape index: {}]  }
   0x1   :  { %9 = vsyncpa [#allocation3 + $0x1], 0 }
   0x2   :  { %10 = vsyncpa [#allocation6], 0 }
   0x3   :  { %11 = vsyncpa [#allocation4], 0 }
   0x4   :  { %13 = vsyncpa [#allocation4 + $0x1], 0  ;;  %s1101_s9 = smov 0   ;;  %s1103_s10 = smov 0  }
   0x5   :  { %s1105_s11 = smov 0   ;;  %s1107_s12 = smov 0  }
   0x6 LB: > { %s1122_s13 = sadd.s32 4294967295, %s1076_s12   ;;  %s638_s14 = sadd.s32 4294967294, %s1076_s12   ;;  %s1076_s12 = sphi %s1107_s12, %s1361_s12   ;;  %s1072_s11 = sphi %s1105_s11, %s1360_s11   ;;  %s1068_s10 = sphi %s1103_s10, %s1359_s10   ;;  %s1064_s9 = sphi %s1101_s9, %s1358_s9  }
   0x7   : > { %p39_p0 = scmp.ne.s32.totalorder %s1068_s10, %s1064_s9  ;;  %p1343_p1 = scmp.eq.s32.totalorder %s1122_s13, 0 }
   0x8   : > { %p90_p3 = scmp.eq.s32.totalorder %s638_s14, 3  ;;  %p639_p5 = scmp.ge.s32.totalorder %s1076_s12, 1 }
   0x9   : > { %p1131_p4 = por %p1343_p1, %p39_p0  ;;  %p97_p7 = scmp.lt.s32.totalorder %s1076_s12, 5 }
   0xa   : > { %p1136_p6 = por %p90_p3, %p39_p0  ;;  %s1078_s18 = smov [#allocation5]  }
   0xb   : > { %s1346_s15 = scalar_select %p1131_p4, 1, 0 }
   0xc   : > { %s1347_s16 = scalar_select %p1136_p6, 1, 0 }
   0xd   : > { %p1141_p8 = pnand %p639_p5, %p97_p7  ;;  %s109_s19 = sshll.u32 %s1078_s18, 4  ;;  %s110_s19 = int_to_ptr.vmem [resolvable:$true] %s109_s19 }
   0xe   : > { %s1154_s21 = sadd.s32 1, %s1076_s12   ;;  %s26_s22 = sadd.s32 1, %s1072_s11 }
   0xf   : > { %s1348_s17 = scalar_select %p1141_p8, 1, 0 }
  0x10   : > { %p888_p9 = pneg %p1141_p8  ;;  %s23_s23 = ssub.s32 %s1076_s12, %s1154_s21 }
  0x11   : > { %s948_s26 = scalar_lea.hbm %s1341_s1, 6272 }
  0x12   : > { %p1149_p10 = pnand %p888_p9, %p1343_p1  ;;  %p949_p11 = scmp.ne.s32.totalorder %s1341_s1, %s948_s26 }
  0x13   : > { %p955_p3 = scmp.lt.u32.totalorder %s948_s26, %s1341_s1 }
  0x14   : > { %p950_p12 = pneg %p1149_p10 }
  0x16   : > { %p951_p13 = pnand %p950_p12, %p949_p11 }
  0x18   : > { %p952_p0 = pneg %p951_p13 }
  0x1a   : > { %p957_p5 = pnand %p955_p3, %p952_p0 }
  0x1c   : > { %960 = shalt.err (!%p957_p5)
}
  0x1d   : > { %s961_s3 = scalar_lea.vmem %s110_s19, 6272  ;;  %p969_p2 = scmp.lt.s32.totalorder %s110_s19, %s110_s19 }
  0x1e   : > { %p962_p7 = scmp.ne.s32.totalorder %s110_s19, %s961_s3  ;;  %p970_p6 = scmp.lt.s32.totalorder %s961_s3, %s961_s3 }
  0x20   : > { %p964_p9 = pnand %p962_p7, %p950_p12  ;;  %p971_p4 = por %p970_p6, %p969_p2 }
  0x22   : > { %p965_p1 = pneg %p964_p9 }
  0x24   : > { %p972_p8 = pnand %p971_p4, %p965_p1 }
  0x26   : > { %975 = shalt.err (!%p972_p8)
}
  0x27   : > { %s1079_s4 = smov 128   ;;  %s1080_s5 = smov 8  }
  0x28   : > { %891 = dma.hbm_to_vmem [thread:$0]  (!%p1149_p10), %s1341_s1, 6272, %s110_s19, [#allocation6], %s1079_s4, %s1079_s4, %s1080_s5  }
  0x29   : > { %p24_p11 = scmp.eq.s32.totalorder %s23_s23, 0  ;;  %p33_p2 = scmp.ne.s32.totalorder %s1072_s11, %s1068_s10 }
  0x2a   : > { %p34_p1 = scmp.eq.s32.totalorder %s1076_s12, 0  ;;  %p901_p4 = scmp.lt.s32.totalorder %s1076_s12, 4 }
  0x2b   : > { %s1180_s8 = scalar_select %p24_p11, %s1072_s11, %s26_s22  }
  0x2c   : > { %p35_p6 = por %p34_p1, %p33_p2  ;;  %p1350_p8 = scmp.eq.s32.totalorder %s1122_s13, 3 }
  0x2d   : > { %s123_s18 = sand.u32 1, %s1072_s11   ;;  %s643_s24 = sshll.u32 %s1076_s12, 7 }
  0x2e   : > { %p1184_p12 = por %p1350_p8, %p33_p2  ;;  %s642_s25 = sshll.u32 %s123_s18, 3 }
  0x2f   : > { %s1193_s27 = scalar_lea.hbm %s1340_s0, %s643_s24  ;;  %s127_s19 = scalar_lea.vmem [#allocation2], %s642_s25 }
  0x30   : > { %s134_s22 = sshll.u32 %s127_s19, 4  ;;  %p1195_p10 = pnand %p901_p4, %p35_p6  ;;  %s1199_s22 = int_to_ptr.vmem [resolvable:$true] %s134_s22 }
  0x31   : > { %s124_s28 = scalar_lea.sflag [#allocation3], %s123_s18  ;;  %s976_s29 = scalar_lea.hbm %s1193_s27, 128 }
  0x32   : > { %p977_p13 = scmp.ne.s32.totalorder %s1193_s27, %s976_s29  ;;  %p978_p0 = pneg %p1195_p10 }
  0x33   : > { %s981_s4 = scalar_lea.hbm %s1340_s0, 512  ;;  %p982_p7 = scmp.lt.u32.totalorder %s1193_s27, %s1340_s0 }
  0x34   : > { %p979_p3 = pnand %p978_p0, %p977_p13  ;;  %p983_p9 = scmp.lt.u32.totalorder %s981_s4, %s976_s29 }
  0x35   : > { %p985_p2 = scmp.lt.u32.totalorder %s976_s29, %s1193_s27 }
  0x36   : > { %p980_p5 = pneg %p979_p3  ;;  %p984_p11 = por %p983_p9, %p982_p7 }
  0x38   : > { %p986_p1 = por %p985_p2, %p984_p11 }
  0x3a   : > { %p987_p4 = pnand %p986_p1, %p980_p5 }
  0x3c   : > { %990 = shalt.err (!%p987_p4)
}
  0x3d   : > { %s991_s7 = scalar_lea.vmem %s1199_s22, 128  ;;  %s1081_s18 = smov [#allocation2]  }
  0x3e   : > { %p992_p6 = scmp.ne.s32.totalorder %s1199_s22, %s991_s7  ;;  %s996_s24 = sshll.u32 %s1081_s18, 4  ;;  %s997_s24 = int_to_ptr.vmem [resolvable:$false] %s996_s24 }
  0x3f   : > { %s998_s25 = scalar_lea.vmem %s997_s24, 256  ;;  %p999_p3 = scmp.lt.s32.totalorder %s1199_s22, %s997_s24 }
  0x40   : > { %p994_p8 = pnand %p992_p6, %p978_p0  ;;  %p1000_p7 = scmp.lt.s32.totalorder %s998_s25, %s991_s7 }
  0x42   : > { %p995_p13 = pneg %p994_p8  ;;  %p1001_p9 = por %p1000_p7, %p999_p3 }
  0x44   : > { %p1002_p11 = pnand %p1001_p9, %p995_p13 }
  0x46   : > { %1005 = shalt.err (!%p1002_p11)
}
  0x47   : > { %895 = dma.hbm_to_vmem [thread:$0]  (!%p1195_p10), %s1193_s27, 128, %s1199_s22, %s124_s28  }
  0x48   : > { %p1353_p5 = scmp.ne.s32.totalorder %s1348_s17, 0 }
  0x49   : > { %s1229_s20 = sand.u32 (!%p1353_p5), 1, %s1068_s10   ;;  %p1354_p0 = scmp.ne.s32.totalorder (!%p1353_p5), %s1346_s15, 0 }
  0x4a   : > { %143 = sbr.rel (%p1353_p5) target bundleno = 876 (0x36c), region = 28  ;;  %s645_s26 = sshll.u32 (!%p1353_p5), %s1229_s20, 3 }
  0x4b   : > { %s146_s19 = scalar_lea.sflag (!%p1353_p5), [#allocation3], %s1229_s20  ;;  %s149_s29 = scalar_lea.vmem (!%p1353_p5), [#allocation2], %s645_s26 }
  0x51   : > { %1051 = dma.done.wait (%p1354_p0), %s146_s19, 128  }
  0x52   : > { %1053 = vsyncadd (%p1354_p0), %s146_s19, 4294967168  ;;  %p1355_p10 = scmp.eq.s32.totalorder %s1122_s13, 0 }
  0x54   : > { %1055 = dma.done.wait (%p1355_p10), [#allocation6], 6272   ;;  %p1356_p2 = pmov %p1355_p10 }
  0x55   : > { %v1082_v0 = vmov 0.0|0.0   ;;  %vm1083_vm0 = vmmov 0   ;;  %v1084_v1 = vmov 0.0   ;;  %v176_v2 = vld [vmem:[#allocation5 + $0x8] sm:$0xff]  ;;  %v177_v3 = vld [vmem:[#allocation5 + $0x10] sm:$0xff]  ;;  %v178_v4 = vld [vmem:[#allocation5 + $0x18] sm:$0xff] }
  0x56   : > { %1057 = vsyncadd (%p1356_p2), [#allocation6], 4294961024  ;;  %808 = vmatprep.subr.bf16.mxu0 %v1082_v0  ;;  %735 = vmatprep.mubr.msk.f32.mxu0 %vm1083_vm0, %v1084_v1  ;;  %v809_v5 = vpack.c.bf16 %v177_v3, %v176_v2  ;;  %v179_v6 = vld [vmem:[#allocation5 + $0x20] sm:$0xff]  ;;  %v180_v8 = vld [vmem:[#allocation5 + $0x28] sm:$0xff]  ;;  %s649_s15 = sshll.u32 %s1122_s13, 7  ;;  %s173_s17 = scalar_lea.vmem [#allocation7], %s645_s26 }
  0x57   : > { %832 = vmatprep.subr.bf16.mxu1 %v1082_v0  ;;  %770 = vmatprep.mubr.msk.f32.mxu1 %vm1083_vm0, %v1084_v1  ;;  %v812_v7 = vpack.c.bf16 %v179_v6, %v178_v4  ;;  %v181_v9 = vld [vmem:[#allocation5 + $0x30] sm:$0xff]  ;;  %v182_v14 = vld [vmem:[#allocation5 + $0x38] sm:$0xff]  ;;  %v183_v15 = vld [vmem:[#allocation5 + $0x40] sm:$0xff]  ;;  %s558_s27 = sshll.u32 %s173_s17, 4  ;;  %s1297_s28 = scalar_lea.hbm %s1342_s2, %s649_s15  ;;  %s1299_s27 = int_to_ptr.vmem [resolvable:$true] %s558_s27 }
  0x58   : > { %810 = vmatpush3.bf16.msra.mxu0 %v809_v5  ;;  %v174_v10 = vld [vmem:[%s149_s29] sm:$0xff]  ;;  %v815_v13 = vpack.c.bf16 %v181_v9, %v180_v8  ;;  %v818_v20 = vpack.c.bf16 %v183_v15, %v182_v14  ;;  %v184_v21 = vld [vmem:[#allocation5 + $0x48] sm:$0xff]  ;;  %v187_v29 = vld [vmem:[#allocation5 + $0x60] sm:$0xff]  ;;  %s545_s30 = scalar_lea.sflag [#allocation4], %s1229_s20  ;;  %s1006_s3 = scalar_lea.vmem %s1299_s27, 128 }
  0x59   : > { %811 = vmatprep.subr.bf16.mxu0 %v1082_v0  ;;  %v224_v11 = vrot.slane %v174_v10, 4  ;;  %v230_v12 = vmul.f32 %v174_v10, %v174_v10  ;;  %v185_v22 = vld [vmem:[#allocation5 + $0x50] sm:$0xff]  ;;  %v186_v28 = vld [vmem:[#allocation5 + $0x58] sm:$0xff]  ;;  %v188_v35 = vld [vmem:[#allocation5 + $0x68] sm:$0xff]  ;;  %p1007_p1 = scmp.ne.s32.totalorder %s1299_s27, %s1006_s3  ;;  %s1085_s13 = smov [#allocation7]  }
  0x5a   : > { %v821_v27 = vpack.c.bf16 %v185_v22, %v184_v21  ;;  %v824_v34 = vpack.c.bf16 %v187_v29, %v186_v28  ;;  %v189_v36 = vld [vmem:[#allocation5 + $0x70] sm:$0xff]  ;;  %v190_v41 = vld [vmem:[#allocation5 + $0x78] sm:$0xff]  ;;  %v191_v42 = vld [vmem:[#allocation5 + $0x80] sm:$0xff]  ;;  %s1010_s4 = sshll.u32 %s1085_s13, 4  ;;  %s1011_s4 = int_to_ptr.vmem [resolvable:$false] %s1010_s4 }
  0x5b   : > { %v225_v16 = vadd.f32 %v224_v11, %v174_v10  ;;  %v231_v17 = vrot.slane %v230_v12, 4  ;;  %v827_v40 = vpack.c.bf16 %v189_v36, %v188_v35  ;;  %v830_v45 = vpack.c.bf16 %v191_v42, %v190_v41  ;;  %v192_v50 = vld [vmem:[#allocation5 + $0x88] sm:$0xff]  ;;  %v193_v51 = vld [vmem:[#allocation5 + $0x90] sm:$0xff]  ;;  %v194_v53 = vld [vmem:[#allocation5 + $0x98] sm:$0xff]  ;;  %p1008_p4 = pnand %p1007_p1, %p1184_p12  ;;  %s1012_s5 = scalar_lea.vmem %s1011_s4, 256 }
  0x5c   : > { %813 = vmatpush3.bf16.msra.mxu0 %v812_v7  ;;  %v833_v52 = vpack.c.bf16 %v193_v51, %v192_v50  ;;  %v195_v54 = vld [vmem:[#allocation5 + $0xa0] sm:$0xff]  ;;  %v196_v56 = vld [vmem:[#allocation5 + $0xa8] sm:$0xff]  ;;  %v197_v57 = vld [vmem:[#allocation5 + $0xb0] sm:$0xff]  ;;  %v247_v11 = vlaneseq  ;;  %p1013_p8 = scmp.lt.s32.totalorder %s1299_s27, %s1011_s4  ;;  %p1014_p13 = scmp.lt.s32.totalorder %s1012_s5, %s1006_s3 }
  0x5d   : > { %814 = vmatprep.subr.bf16.mxu0 %v1082_v0  ;;  %v226_v18 = vrot.slane %v225_v16, 2  ;;  %v232_v19 = vadd.f32 %v231_v17, %v230_v12  ;;  %v836_v55 = vpack.c.bf16 %v195_v54, %v194_v53  ;;  %v839_v58 = vpack.c.bf16 %v197_v57, %v196_v56  ;;  %v198_v59 = vld [vmem:[#allocation5 + $0xb8] sm:$0xff]  ;;  %v199_v60 = vld [vmem:[#allocation5 + $0xc0] sm:$0xff]  ;;  %v200_v62 = vld [vmem:[#allocation5 + $0xc8] sm:$0xff]  ;;  %p1009_p6 = pneg %p1008_p4 }
  0x5e   : > { %834 = vmatpush3.bf16.msra.mxu1 %v833_v52  ;;  %v842_v61 = vpack.c.bf16 %v199_v60, %v198_v59  ;;  %v201_v63 = vld [vmem:[#allocation5 + $0xd0] sm:$0xff]  ;;  %v202_v2 = vld [vmem:[#allocation5 + $0xd8] sm:$0xff]  ;;  %v203_v3 = vld [vmem:[#allocation5 + $0xe0] sm:$0xff]  ;;  %v1266_v12 = vshrl.u32 %v247_v11, 7  ;;  %p1015_p3 = por %p1014_p13, %p1013_p8 }
  0x5f   : > { %v227_v23 = vadd.f32 %v226_v18, %v225_v16  ;;  %v233_v24 = vrot.slane %v232_v19, 2  ;;  %835 = vmatprep.subr.bf16.mxu1 %v1082_v0  ;;  %v848_v4 = vpack.c.bf16 %v203_v3, %v202_v2  ;;  %v204_v5 = vld [vmem:[#allocation5 + $0xe8] sm:$0xff]  ;;  %v205_v6 = vld [vmem:[#allocation5 + $0xf0] sm:$0xff]  ;;  %v206_v8 = vld [vmem:[#allocation5 + $0xf8] sm:$0xff] }
  0x60   : > { %816 = vmatpush3.bf16.msra.mxu0 %v815_v13  ;;  %v851_v7 = vpack.c.bf16 %v205_v6, %v204_v5  ;;  %v207_v9 = vld [vmem:[#allocation5 + $0x100] sm:$0xff]  ;;  %v249_v13 = vsub.s32 0, %v1266_v12  ;;  %v350_v41 = vsub.s32 1, %v1266_v12  ;;  %v208_v50 = vld [vmem:[#allocation5 + $0x108] sm:$0xff]  ;;  %v209_v51 = vld [vmem:[#allocation5 + $0x110] sm:$0xff]  ;;  %v360_v11 = vsub.s32 3, %v1266_v12  ;;  %p1016_p7 = pnand %p1015_p3, %p1009_p6 }
  0x61   : > { %817 = vmatprep.subr.bf16.mxu0 %v1082_v0  ;;  %v228_v25 = vrot.slane %v227_v23, 1  ;;  %v234_v26 = vadd.f32 %v233_v24, %v232_v19  ;;  %v1269_v14 = vld [vmem:[#allocation5] sm:$0xff]  ;;  %v857_v52 = vpack.c.bf16 %v209_v51, %v208_v50  ;;  %v210_v53 = vld [vmem:[#allocation5 + $0x118] sm:$0xff]  ;;  %v212_v56 = vld [vmem:[#allocation5 + $0x128] sm:$0xff] }
  0x62   : > { %837 = vmatpush3.bf16.msra.mxu1 %v836_v55  ;;  %v250_v15 = vrot.slane %v1269_v14, %v249_v13  ;;  %v211_v54 = vld [vmem:[#allocation5 + $0x120] sm:$0xff]  ;;  %v213_v57 = vld [vmem:[#allocation5 + $0x130] sm:$0xff]  ;;  %v214_v59 = vld [vmem:[#allocation5 + $0x138] sm:$0xff]  ;;  %v361_v13 = vrot.slane %v1269_v14, %v360_v11 }
  0x63   : > { %v229_v30 = vadd.f32 %v228_v25, %v227_v23  ;;  %v235_v31 = vrot.slane %v234_v26, 1  ;;  %838 = vmatprep.subr.bf16.mxu1 %v1082_v0  ;;  %v860_v55 = vpack.c.bf16 %v211_v54, %v210_v53  ;;  %v215_v60 = vld [vmem:[#allocation5 + $0x140] sm:$0xff]  ;;  %v218_v2 = vld [vmem:[#allocation5 + $0x158] sm:$0xff]  ;;  %v220_v5 = vld [vmem:[#allocation5 + $0x168] sm:$0xff] }
  0x64   : > { %819 = vmatpush3.bf16.msra.mxu0 %v818_v20  ;;  %v219_v3 = vld [vmem:[#allocation5 + $0x160] sm:$0xff]  ;;  %v221_v6 = vld [vmem:[#allocation5 + $0x170] sm:$0xff] }
  0x65   : > { %820 = vmatprep.subr.bf16.mxu0 %v1082_v0  ;;  %v236_v32 = vadd.f32 %v235_v31, %v234_v26  ;;  %v237_v33 = vmul.f32 0.125, %v229_v30 }
  0x66   : > { %840 = vmatpush3.bf16.msra.mxu1 %v839_v58  ;;  %v863_v58 = vpack.c.bf16 %v213_v57, %v212_v56 }
  0x67   : > { %v238_v37 = vmul.f32 0.125, %v236_v32  ;;  %v239_v38 = vmul.f32 %v237_v33, %v237_v33  ;;  %841 = vmatprep.subr.bf16.mxu1 %v1082_v0 }
  0x68   : > { %822 = vmatpush3.bf16.msra.mxu0 %v821_v27 }
  0x69   : > { %823 = vmatprep.subr.bf16.mxu0 %v1082_v0  ;;  %v240_v39 = vsub.f32 %v238_v37, %v239_v38 }
  0x6a   : > { %843 = vmatpush3.bf16.msra.mxu1 %v842_v61  ;;  %v866_v61 = vpack.c.bf16 %v215_v60, %v214_v59 }
  0x6b   : > { %v241_v43 = vmax.f32 %v240_v39, 0.0  ;;  %844 = vmatprep.subr.bf16.mxu1 %v1082_v0 }
  0x6c   : > { %825 = vmatpush3.bf16.msra.mxu0 %v824_v34 }
  0x6d   : > { %826 = vmatprep.subr.bf16.mxu0 %v1082_v0  ;;  %v242_v44 = vadd.f32 1e-05, %v241_v43 }
  0x6f   : > { %942 = vrsqrt.f32 %v242_v44 }
  0x70   : > { %828 = vmatpush3.bf16.msra.mxu0 %v827_v40 }
  0x71   : > { %829 = vmatprep.subr.bf16.mxu0 %v1082_v0 }
  0x74   : > { %831 = vmatpush3.bf16.msra.mxu0 %v830_v45  ;;  %v355_v45 = vsub.s32 2, %v1266_v12 }
  0x75   : > { %856 = vmatprep.subr.bf16.mxu0 %v1082_v0 }
  0x79   : > { %v943_v46 = vpop.eup %942 }
  0x7a   : > { %v244_v47 = vmul.f32 %v943_v46, %v174_v10  ;;  %v245_v48 = vmul.f32 %v943_v46, %v237_v33  ;;  %v854_v10 = vpack.c.bf16 %v207_v9, %v206_v8  ;;  %v222_v8 = vld [vmem:[#allocation5 + $0x178] sm:$0xff]  ;;  %v223_v9 = vld [vmem:[#allocation5 + $0x180] sm:$0xff] }
  0x7c   : > { %v246_v49 = vsub.f32 %v244_v47, %v245_v48 }
  0x7e   : > { %736 = vmatmul.mubr.f32.vlgmr.msra.gmra.mrb[0].mxu0 %v246_v49 }
  0x7f   : > { %805 = vmatprep.mubr.msk.f32.mxu0 %vm1083_vm0, %v1084_v1  ;;  %v845_v1 = vpack.c.bf16 %v201_v63, %v200_v62  ;;  %858 = vmatpush3.bf16.msra.mxu0 %v857_v52  ;;  %v216_v62 = vld [vmem:[#allocation5 + $0x148] sm:$0xff]  ;;  %v217_v63 = vld [vmem:[#allocation5 + $0x150] sm:$0xff] }
  0x80   : > { %859 = vmatprep.subr.bf16.mxu0 %v1082_v0 }
  0x81   : > { %846 = vmatpush3.bf16.msra.mxu1 %v845_v1  ;;  %v869_v1 = vpack.c.bf16 %v217_v63, %v216_v62 }
  0x82   : > { %847 = vmatprep.subr.bf16.mxu1 %v1082_v0 }
  0x83   : > { %861 = vmatpush3.bf16.msra.mxu0 %v860_v55 }
  0x84   : > { %862 = vmatprep.subr.bf16.mxu0 %v1082_v0 }
  0x85   : > { %849 = vmatpush3.bf16.msra.mxu1 %v848_v4  ;;  %v872_v4 = vpack.c.bf16 %v219_v3, %v218_v2 }
  0x86   : > { %850 = vmatprep.subr.bf16.mxu1 %v1082_v0 }
  0x87   : > { %864 = vmatpush3.bf16.msra.mxu0 %v863_v58 }
  0x88   : > { %865 = vmatprep.subr.bf16.mxu0 %v1082_v0 }
  0x89   : > { %852 = vmatpush3.bf16.msra.mxu1 %v851_v7  ;;  %v875_v7 = vpack.c.bf16 %v221_v6, %v220_v5 }
  0x8a   : > { %853 = vmatprep.subr.bf16.mxu1 %v1082_v0 }
  0x8b   : > { %867 = vmatpush3.bf16.msra.mxu0 %v866_v61 }
  0x8c   : > { %868 = vmatprep.subr.bf16.mxu0 %v1082_v0 }
  0x8d   : > { %855 = vmatpush3.bf16.msra.mxu1 %v854_v10  ;;  %v878_v10 = vpack.c.bf16 %v223_v9, %v222_v8 }
  0x8f   : > { %870 = vmatpush3.bf16.msra.mxu0 %v869_v1 }
  0x90   : > { %871 = vmatprep.subr.bf16.mxu0 %v1082_v0 }
  0x93   : > { %873 = vmatpush3.bf16.msra.mxu0 %v872_v4 }
  0x94   : > { %874 = vmatprep.subr.bf16.mxu0 %v1082_v0 }
  0x97   : > { %876 = vmatpush3.bf16.msra.mxu0 %v875_v7 }
  0x98   : > { %877 = vmatprep.subr.bf16.mxu0 %v1082_v0 }
  0x9b   : > { %879 = vmatpush3.bf16.msra.mxu0 %v878_v10 }
 0x151   : > { %v317_v16 = vpop.f32.mrb[0].mxu0 }
 0x152   : > { %v318_v17 = vadd.f32 %v317_v16, %v250_v15  ;;  %v737_v18 = vpop.f32.mrb[1].mxu0 }
 0x154   : > { %v321_v19 = vmax.f32 %v318_v17, 0.0 }
 0x156   : > { %v322_v20 = vrot.slane %v321_v19, 4  ;;  %v328_v21 = vmul.f32 %v321_v19, %v321_v19 }
 0x158   : > { %v323_v22 = vadd.f32 %v322_v20, %v321_v19  ;;  %v329_v23 = vrot.slane %v328_v21, 4 }
 0x15a   : > { %v324_v24 = vrot.slane %v323_v22, 2  ;;  %v330_v25 = vadd.f32 %v329_v23, %v328_v21 }
 0x15c   : > { %v325_v26 = vadd.f32 %v324_v24, %v323_v22  ;;  %v331_v27 = vrot.slane %v330_v25, 2 }
 0x15e   : > { %v326_v28 = vrot.slane %v325_v26, 1  ;;  %v332_v29 = vadd.f32 %v331_v27, %v330_v25 }
 0x160   : > { %v333_v30 = vrot.slane %v332_v29, 1  ;;  %v327_v31 = vadd.f32 %v326_v28, %v325_v26 }
 0x162   : > { %v334_v32 = vadd.f32 %v333_v30, %v332_v29  ;;  %v335_v33 = vmul.f32 0.125, %v327_v31 }
 0x164   : > { %v336_v34 = vmul.f32 0.125, %v334_v32  ;;  %v337_v35 = vmul.f32 %v335_v33, %v335_v33 }
 0x166   : > { %v338_v36 = vsub.f32 %v336_v34, %v337_v35 }
 0x168   : > { %v339_v37 = vmax.f32 %v338_v36, 0.0 }
 0x16a   : > { %v340_v38 = vadd.f32 1e-05, %v339_v37 }
 0x16c   : > { %944 = vrsqrt.f32 %v340_v38 }
 0x176   : > { %v945_v39 = vpop.eup %944 }
 0x177   : > { %v342_v40 = vmul.f32 %v945_v39, %v1269_v14  ;;  %v461_v39 = vsub.s32 4, %v1266_v12 }
 0x179   : > { %v343_v42 = vmul.f32 %v342_v40, %v335_v33  ;;  %v351_v44 = vrot.slane %v342_v40, %v350_v41 }
 0x17b   : > { %v345_v43 = vrot.slane %v343_v42, 7  ;;  %v352_v47 = vmul.f32 %v351_v44, %v321_v19 }
 0x17d   : > { %v347_v46 = vsub.f32 %v1269_v14, %v345_v43  ;;  %v466_v43 = vsub.s32 5, %v1266_v12 }
 0x17f   : > { %v356_v48 = vrot.slane %v347_v46, %v355_v45 }
 0x181   : > { %v357_v49 = vadd.f32 %v356_v48, %v352_v47  ;;  %v471_v48 = vsub.s32 6, %v1266_v12 }
 0x183   : > { %771 = vmatmul.mubr.f32.vlgmr.msra.gmra.mrb[0].mxu1 %v357_v49  ;;  %v472_v49 = vrot.slane %v1269_v14, %v471_v48 }
 0x256   : > { %v428_v15 = vpop.f32.mrb[0].mxu1 }
 0x257   : > { %v429_v16 = vadd.f32 %v428_v15, %v361_v13  ;;  %v772_v17 = vpop.f32.mrb[1].mxu1 }
 0x259   : > { %v432_v18 = vmax.f32 %v429_v16, 0.0 }
 0x25b   : > { %v433_v19 = vrot.slane %v432_v18, 4  ;;  %v439_v20 = vmul.f32 %v432_v18, %v432_v18 }
 0x25d   : > { %v434_v21 = vadd.f32 %v433_v19, %v432_v18  ;;  %v440_v22 = vrot.slane %v439_v20, 4 }
 0x25f   : > { %v435_v23 = vrot.slane %v434_v21, 2  ;;  %v441_v24 = vadd.f32 %v440_v22, %v439_v20 }
 0x261   : > { %v436_v25 = vadd.f32 %v435_v23, %v434_v21  ;;  %v442_v26 = vrot.slane %v441_v24, 2 }
 0x263   : > { %v437_v27 = vrot.slane %v436_v25, 1  ;;  %v443_v28 = vadd.f32 %v442_v26, %v441_v24 }
 0x265   : > { %v438_v0 = vadd.f32 %v437_v27, %v436_v25  ;;  %v444_v29 = vrot.slane %v443_v28, 1 }
 0x267   : > { %v445_v30 = vadd.f32 %v444_v29, %v443_v28  ;;  %v446_v31 = vmul.f32 0.125, %v438_v0 }
 0x269   : > { %v447_v32 = vmul.f32 0.125, %v445_v30  ;;  %v448_v33 = vmul.f32 %v446_v31, %v446_v31 }
 0x26b   : > { %v449_v34 = vsub.f32 %v447_v32, %v448_v33 }
 0x26d   : > { %v450_v35 = vmax.f32 %v449_v34, 0.0 }
 0x26f   : > { %v451_v36 = vadd.f32 1e-05, %v450_v35 }
 0x271   : > { %946 = vrsqrt.f32 %v451_v36 }
 0x27b   : > { %v947_v37 = vpop.eup %946 }
 0x27c   : > { %v453_v38 = vmul.f32 %v947_v37, %v1269_v14 }
 0x27e   : > { %v454_v40 = vmul.f32 %v453_v38, %v446_v31  ;;  %v462_v41 = vrot.slane %v453_v38, %v461_v39 }
 0x280   : > { %v456_v42 = vrot.slane %v454_v40, 7  ;;  %v463_v45 = vmul.f32 %v462_v41, %v432_v18 }
 0x282   : > { %v458_v44 = vsub.f32 %v1269_v14, %v456_v42 }
 0x284   : > { %v467_v46 = vrot.slane %v458_v44, %v466_v43 }
 0x286   : > { %v468_v47 = vadd.f32 %v467_v46, %v463_v45 }
 0x288   : > { %806 = vmatmul.mubr.f32.vlgmr.msra.gmra.mrb[2].mxu0 %v468_v47 }
 0x35b   : > { %v539_v50 = vpop.f32.mrb[2].mxu0 }
 0x35c   : > { %v540_v51 = vadd.f32 %v539_v50, %v472_v49  ;;  %v807_v52 = vpop.f32.mrb[3].mxu0 }
 0x35e   : > { %543 = vst [vmem:[%s173_s17] sm:$0xff] %v540_v51 }
 0x35f   : > { %1019 = shalt.err (!%p1016_p7)
}
 0x360   : > { %s1020_s6 = scalar_lea.hbm %s1297_s28, 128  ;;  %s1024_s24 = scalar_lea.hbm %s1342_s2, 512 }
 0x361   : > { %p1021_p9 = scmp.ne.s32.totalorder %s1297_s28, %s1020_s6  ;;  %p1025_p0 = scmp.lt.u32.totalorder %s1297_s28, %s1342_s2 }
 0x362   : > { %p1026_p10 = scmp.lt.u32.totalorder %s1024_s24, %s1020_s6  ;;  %p1028_p1 = scmp.lt.u32.totalorder %s1020_s6, %s1297_s28 }
 0x363   : > { %p1022_p11 = pnand %p1021_p9, %p1184_p12 }
 0x364   : > { %p1027_p2 = por %p1026_p10, %p1025_p0 }
 0x365   : > { %p1023_p5 = pneg %p1022_p11 }
 0x366   : > { %p1029_p4 = por %p1028_p1, %p1027_p2 }
 0x368   : > { %p1030_p6 = pnand %p1029_p4, %p1023_p5 }
 0x36a   : > { %1033 = shalt.err (!%p1030_p6)
}
 0x36b   : > { %886 = dma.vmem_to_hbm [thread:$0]  (%p1184_p12), %s1299_s27, 128, %s1297_s28, %s545_s30  }
 0x36c PF: > { %p903_p8 = scmp.ge.s32.totalorder %s1076_s12, 2  ;;  %s570_s26 = sand.u32 1, %s1064_s9  }
 0x36d   : > { %p1357_p13 = scmp.ne.s32.totalorder %s1347_s16, 0  ;;  %s571_s19 = scalar_lea.sflag [#allocation4], %s570_s26 }
 0x36f   : > { %p897_p3 = pnand %p903_p8, %p1357_p13 }
 0x371   : > { %1059 = dma.done.wait (!%p897_p3), %s571_s19, 128  }
 0x372   : > { %1061 = vsyncadd (!%p897_p3), %s571_s19, 4294967168  ;;  %p16_p7 = scmp.ge.s32.totalorder %s1154_s21, 6   ;;  %s1358_s9 = smov %s1068_s10 }
 0x373   : > { %s1359_s10 = smov %s1072_s11  ;;  %s1360_s11 = smov %s1180_s8 }
 0x374   : > { %s1361_s12 = smov %s1154_s21  ;;  %18 = sbr.rel (!%p16_p7) target bundleno = 6 (0x6), region = 77 }
 0x37b   :  { %576 = vsyncpa [#allocation3], 1 }
 0x37c   :  { %578 = vsyncpa [#allocation3 + $0x1], 1 }
 0x37d   :  { %579 = vsyncpa [#allocation6], 1 }
 0x37e   :  { %580 = vsyncpa [#allocation4], 1 }
 0x37f   :  { %582 = vsyncpa [#allocation4 + $0x1], 1 }

</bundles_post_ra>
